<compile_context>
chip_gen: v7x
topology: tpu7x:2x2x1
jax: 0.10.0
libtpu: 0.0.40
codegen_flags: <defaults>
</compile_context>

<pallas_src>
import functools

import jax
import jax.numpy as jnp
from jax.experimental import pallas as pl
from jax.experimental.pallas import tpu as pltpu


# ----------------------------- fused Pallas kernel ----------------------------

def _gcn_fused_kernel(x_ref, a_ref, w1_ref, b1_ref, w2_ref, b2_ref, out_ref):
    """Fused StandardGCN forward: out = A_hat @ relu(A_hat @ (x@W1) + b1) @ W2 + b2."""
    bf16 = jnp.bfloat16
    f32 = jnp.float32

    a = a_ref[...].astype(bf16)                     # [N, N] normalized adjacency (cast once)

    # ---- layer 1: GCNConv(F_in -> H) -------------------------------------------------
    xw1 = jnp.dot(x_ref[...].astype(bf16), w1_ref[...],
                  preferred_element_type=f32)       # [N, H]   (MXU, bf16 operands, f32 acc)
    h = jnp.dot(a, xw1.astype(bf16),
                preferred_element_type=f32)         # [N, H]   propagation
    h = h + b1_ref[...]                             # bias (f32, VPU)
    h = jnp.maximum(h, 0.0)                         # ReLU (f32, VPU)
    # TODO(synk): F.dropout(training=self.training) is identity in eval/inference mode;
    #             training-mode RNG dropout is not modeled here.

    # ---- layer 2: GCNConv(H -> C_pad), output columns padded to a lane-dense 128 ------
    xw2 = jnp.dot(h.astype(bf16), w2_ref[...],
                  preferred_element_type=f32)       # [N, C_pad]
    out = jnp.dot(a, xw2.astype(bf16),
                  preferred_element_type=f32)       # [N, C_pad] propagation
    out_ref[...] = out + b2_ref[...]                # bias (f32), unmasked lane-dense store


# ----------------------------- wrapper ----------------------------------------

@functools.partial(jax.jit, static_argnums=(3,))
def standard_gcn_pallas(x, a_norm, kernel_params, num_out_features):
    """x: [N, F_in] f32, a_norm: [N, N] f32 normalized adjacency (self-loops included)."""
    w1, b1, w2, b2 = kernel_params                  # w*: bf16 (pre-cast), b*: f32 (b2 padded)
    n = x.shape[0]
    c_pad = w2.shape[1]
    vmem = pl.BlockSpec(memory_space=pltpu.MemorySpace.VMEM)
    out_padded = pl.pallas_call(
        _gcn_fused_kernel,
        out_shape=jax.ShapeDtypeStruct((n, c_pad), jnp.float32),
        in_specs=[vmem] * 6,
        out_specs=vmem,
    )(x, a_norm, w1, b1, w2, b2)
    return out_padded[:, :num_out_features]


# ----------------------------- references -------------------------------------

def _gcn_ref_matched(x, a_norm, w1, b1, w2, b2, num_out):
    """Pure-JAX reference with the SAME numerics as the kernel (bf16 MXU, f32 acc)."""
    bf16, f32 = jnp.bfloat16, jnp.float32
    a = a_norm.astype(bf16)
    xw1 = jnp.dot(x.astype(bf16), w1, preferred_element_type=f32)
    h = jnp.maximum(jnp.dot(a, xw1.astype(bf16), preferred_element_type=f32) + b1, 0.0)
    xw2 = jnp.dot(h.astype(bf16), w2, preferred_element_type=f32)
    out = jnp.dot(a, xw2.astype(bf16), preferred_element_type=f32) + b2
    return out[:, :num_out]


def _gcn_ref_f32(x, a_norm, w1, b1, w2, b2):
    """Full-f32 module-semantics reference (StandardGCN in eval mode)."""
    h = jnp.maximum(a_norm @ (x @ w1) + b1, 0.0)
    return a_norm @ (h @ w2) + b2


# ----------------------------- param init -------------------------------------

def init_gcn_params(key, f_in, hidden, f_out, c_pad):
    k1, k2, k3, k4 = jax.random.split(key, 4)
    w1 = jax.random.normal(k1, (f_in, hidden), jnp.float32) / jnp.sqrt(jnp.float32(f_in))
    b1 = 0.1 * jax.random.normal(k2, (1, hidden), jnp.float32)
    w2 = jax.random.normal(k3, (hidden, f_out), jnp.float32) / jnp.sqrt(jnp.float32(hidden))
    b2 = 0.1 * jax.random.normal(k4, (1, f_out), jnp.float32)
    # Lane-dense padding of the layer-2 output columns (done ONCE, not per call).
    w2p = jnp.zeros((hidden, c_pad), jnp.float32).at[:, :f_out].set(w2)
    b2p = jnp.zeros((1, c_pad), jnp.float32).at[:, :f_out].set(b2)
    return {
        "f32": (w1, b1, w2, b2),                                          # module semantics
        "kernel": (w1.astype(jnp.bfloat16), b1, w2p.astype(jnp.bfloat16), b2p),
    }


# ----------------------------- example / self-check ---------------------------

if __name__ == "__main__":
    # Small shapes: N=16 nodes, num_in_features=8, hidden=300 (module default),
    # num_out_features=32, E=40 random directed edges.
    N, F_IN, HIDDEN, F_OUT, E = 16, 8, 300, 32, 40
    C_PAD = 128  # lane-dense output width (>= F_OUT, multiple of 128)

    key = jax.random.PRNGKey(0)
    kx, ke1, ke2, kp = jax.random.split(key, 4)

    x = jax.random.normal(kx, (N, F_IN), jnp.float32)
    edge_index = jnp.stack([jax.random.randint(ke1, (E,), 0, N),
                            jax.random.randint(ke2, (E,), 0, N)])          # [2, E] (src, dst)

    # Dense adjacency adj[dst, src] with self-loops, then GCN symmetric normalization.
    # TODO(synk): duplicate edges are deduplicated by the dense adjacency; PyG would count
    #             multiplicity in degree / aggregation for multigraphs.
    adj = jnp.zeros((N, N), jnp.float32)
    adj = adj.at[edge_index[1], edge_index[0]].set(1.0)
    adj = adj.at[jnp.arange(N), jnp.arange(N)].set(1.0)
    deg = adj.sum(axis=1)                                   # in-degree incl. self-loop
    dinv = 1.0 / jnp.sqrt(deg)
    a_norm = dinv[:, None] * adj * dinv[None, :]            # D^-1/2 (A+I) D^-1/2

    params = init_gcn_params(kp, F_IN, HIDDEN, F_OUT, C_PAD)

    out = standard_gcn_pallas(x, a_norm, params["kernel"], F_OUT)
    jax.block_until_ready(out)

    ref_m = _gcn_ref_matched(x, a_norm, *params["kernel"], F_OUT)
    ref_f = _gcn_ref_f32(x, a_norm, *params["f32"])

    assert out.shape == (N, F_OUT)
    assert jnp.allclose(out, ref_m, rtol=5e-3, atol=5e-3), "mismatch vs matched-numerics ref"
    assert jnp.allclose(out, ref_f, rtol=5e-2, atol=5e-2), "mismatch vs f32 module semantics"

    print("KERNEL_OK")
</pallas_src>

<mosaic_0001>
module attributes {stable_mosaic.version = 11 : i64} {
  func.func @_gcn_fused_kernel(%arg0: memref<16x8xf32, #tpu.memory_space<vmem>>, %arg1: memref<16x16xf32, #tpu.memory_space<vmem>>, %arg2: memref<8x300xbf16, #tpu.memory_space<vmem>>, %arg3: memref<1x300xf32, #tpu.memory_space<vmem>>, %arg4: memref<300x128xbf16, #tpu.memory_space<vmem>>, %arg5: memref<1x128xf32, #tpu.memory_space<vmem>>, %arg6: memref<16x128xf32, #tpu.memory_space<vmem>>) attributes {dimension_semantics = [], scalar_prefetch = 0 : i64, scratch_operands = 0 : i64, tpu.core_type = #tpu.core_type<tc>} {
    %c0 = arith.constant 0 : index
    %c0_0 = arith.constant 0 : index
    %0 = vector.load %arg1[%c0, %c0_0] : memref<16x16xf32, #tpu.memory_space<vmem>>, vector<16x16xf32>
    %1 = arith.truncf %0 : vector<16x16xf32> to vector<16x16xbf16>
    %c0_1 = arith.constant 0 : index
    %c0_2 = arith.constant 0 : index
    %2 = vector.load %arg0[%c0_1, %c0_2] : memref<16x8xf32, #tpu.memory_space<vmem>>, vector<16x8xf32>
    %3 = arith.truncf %2 : vector<16x8xf32> to vector<16x8xbf16>
    %c0_3 = arith.constant 0 : index
    %c0_4 = arith.constant 0 : index
    %4 = vector.load %arg2[%c0_3, %c0_4] : memref<8x300xbf16, #tpu.memory_space<vmem>>, vector<8x300xbf16>
    %cst = arith.constant dense<0.000000e+00> : vector<16x300xf32>
    %5 = tpu.matmul %3, %4, %cst {dimension_numbers = #tpu.dot_dimension_numbers<[1], [0], [0], [1], [0, 0, 1, 1], [], []>} : vector<16x8xbf16>, vector<8x300xbf16>, vector<16x300xf32> -> vector<16x300xf32>
    %6 = arith.truncf %5 : vector<16x300xf32> to vector<16x300xbf16>
    %cst_5 = arith.constant dense<0.000000e+00> : vector<16x300xf32>
    %7 = tpu.matmul %1, %6, %cst_5 {dimension_numbers = #tpu.dot_dimension_numbers<[1], [0], [0], [1], [0, 0, 1, 1], [], []>} : vector<16x16xbf16>, vector<16x300xbf16>, vector<16x300xf32> -> vector<16x300xf32>
    %c0_6 = arith.constant 0 : index
    %c0_7 = arith.constant 0 : index
    %8 = vector.load %arg3[%c0_6, %c0_7] : memref<1x300xf32, #tpu.memory_space<vmem>>, vector<1x300xf32>
    %9 = vector.broadcast %8 : vector<1x300xf32> to vector<16x300xf32>
    %10 = arith.addf %7, %9 : vector<16x300xf32>
    %cst_8 = arith.constant 0.000000e+00 : f32
    %11 = vector.broadcast %cst_8 : f32 to vector<16x300xf32>
    %12 = arith.maximumf %10, %11 : vector<16x300xf32>
    %13 = arith.truncf %12 : vector<16x300xf32> to vector<16x300xbf16>
    %c0_9 = arith.constant 0 : index
    %c0_10 = arith.constant 0 : index
    %14 = vector.load %arg4[%c0_9, %c0_10] : memref<300x128xbf16, #tpu.memory_space<vmem>>, vector<300x128xbf16>
    %cst_11 = arith.constant dense<0.000000e+00> : vector<16x128xf32>
    %15 = tpu.matmul %13, %14, %cst_11 {dimension_numbers = #tpu.dot_dimension_numbers<[1], [0], [0], [1], [0, 0, 1, 1], [], []>} : vector<16x300xbf16>, vector<300x128xbf16>, vector<16x128xf32> -> vector<16x128xf32>
    %16 = arith.truncf %15 : vector<16x128xf32> to vector<16x128xbf16>
    %cst_12 = arith.constant dense<0.000000e+00> : vector<16x128xf32>
    %17 = tpu.matmul %1, %16, %cst_12 {dimension_numbers = #tpu.dot_dimension_numbers<[1], [0], [0], [1], [0, 0, 1, 1], [], []>} : vector<16x16xbf16>, vector<16x128xbf16>, vector<16x128xf32> -> vector<16x128xf32>
    %c0_13 = arith.constant 0 : index
    %c0_14 = arith.constant 0 : index
    %18 = vector.load %arg5[%c0_13, %c0_14] : memref<1x128xf32, #tpu.memory_space<vmem>>, vector<1x128xf32>
    %19 = vector.broadcast %18 : vector<1x128xf32> to vector<16x128xf32>
    %20 = arith.addf %17, %19 : vector<16x128xf32>
    %c0_15 = arith.constant 0 : index
    %c0_16 = arith.constant 0 : index
    %21 = vector.load %arg6[%c0_15, %c0_16] : memref<16x128xf32, #tpu.memory_space<vmem>>, vector<16x128xf32>
    tpu.vector_store %arg6[%c0_15, %c0_16], %20 {strides = array<i32>} : memref<16x128xf32, #tpu.memory_space<vmem>>, vector<16x128xf32>,
    return
  }
}

</mosaic_0001>

<bundles_post_ra>
// kernel: standard_gcn_pallas.1
= control target key start
LH: loop header
LB: loop body
LE: loop exit
PB: predicated region body
PF: predicated region fallthrough
CT: control target
= control target key end

     0   :  { %11 = vsyncpa [#allocation3], 0  ;;  %s864_s0 = inlined_call_operand.vmem [shape: f32[16,8], index: 0, kind: input, shape index: {}]   ;;  %s865_s1 = inlined_call_operand.vmem [shape: f32[16,16], index: 1, kind: input, shape index: {}]   ;;  %s866_s2 = inlined_call_operand.vmem [shape: bf16[8,300], index: 2, kind: input, shape index: {}]   ;;  %s867_s3 = inlined_call_operand.vmem [shape: f32[1,300], index: 3, kind: input, shape index: {}]   ;;  %s868_s4 = inlined_call_operand.hbm [shape: bf16[300,128], index: 4, kind: input, shape index: {}]   ;;  %s869_s5 = inlined_call_operand.vmem [shape: f32[1,128], index: 5, kind: input, shape index: {}]   ;;  %s870_s6 = inlined_call_operand.hbm [shape: f32[16,128], index: 6, kind: output, shape index: {}]  }
   0x1   :  { %12 = vsyncpa [#allocation4], 0  ;;  %s748_s21 = smov [#allocation2]   ;;  %s700_s25 = scalar_lea.hbm %s868_s4, 2432 }
   0x2   :  { %s26_s22 = sshll.u32 %s748_s21, 4  ;;  %p701_p0 = scmp.ne.s32.totalorder %s868_s4, %s700_s25  ;;  %s27_s22 = int_to_ptr.vmem [resolvable:$true] %s26_s22 }
   0x3   :  { %p704_p1 = scmp.lt.u32.totalorder %s700_s25, %s868_s4 }
   0x5   :  { %p706_p2 = pnand %p704_p1, %p701_p0 }
   0x7   :  { %709 = shalt.err (!%p706_p2)
}
   0x8   :  { %s710_s30 = scalar_lea.vmem %s27_s22, 2432  ;;  %p715_p4 = scmp.lt.s32.totalorder %s27_s22, %s27_s22 }
   0x9   :  { %p711_p3 = scmp.ne.s32.totalorder %s27_s22, %s710_s30  ;;  %p716_p5 = scmp.lt.s32.totalorder %s710_s30, %s710_s30 }
   0xb   :  { %p717_p6 = por %p716_p5, %p715_p4 }
   0xd   :  { %p718_p7 = pnand %p717_p6, %p711_p3 }
   0xf   :  { %721 = shalt.err (!%p718_p7)
}
  0x10   :  { %s749_s7 = smov 64   ;;  %s750_s8 = smov 4  }
  0x11   :  { %32 = dma.hbm_to_vmem [thread:$0]  %s868_s4, 2432, %s27_s22, [#allocation3], %s749_s7, %s749_s7, %s750_s8  }
  0x12   :  { %744 = dma.done.wait [#allocation3], 2432  }
  0x13   :  { %745 = vsyncadd [#allocation3], 4294964864  ;;  %v751_v0 = vmov 0   ;;  %vm59_vm0 = vcmask 1043456   ;;  %v45_v1 = vld [vmem:[%s866_s2] sm:$0xff]  ;;  %v43_v3 = vld [vmem:[%s864_s0 + $0x8] sm:$0xff]  ;;  %v158_v45 = vlaneseq }
  0x14   :  { %101 = vmatprep.mubr.bf16.mxu1 %v751_v0  ;;  %209 = vmatprep.mubr.bf16.mxu0 %v751_v0  ;;  %v42_v2 = vld [vmem:[%s864_s0] sm:$0xff]  ;;  %vm55_vm1 = vcmask 64512   ;;  %v580_v4 = vcombine.high %v45_v1, %v45_v1  ;;  %v579_v5 = vcombine.low %v45_v1, %v45_v1  ;;  %v680_v6 = vld [vmem:[%s866_s2 + $0x8] ss:$0 sps:$4 sm:$0xff]   ;;  %v752_v10 = vmov 0.0   ;;  %v681_v19 = vld [vmem:[#allocation2 + $0x40] sm:$0xff]  }
  0x15   :  { %v44_v8 = vpack.c.bf16 %v43_v3, %v42_v2  ;;  %v67_v9 = vsel %vm59_vm0, %v680_v6, 0  ;;  %vm753_vm2 = vmmov 0   ;;  %v39_v16 = vld [vmem:[%s865_s1] sm:$0xff]  ;;  %v40_v17 = vld [vmem:[%s865_s1 + $0x8] sm:$0xff]  ;;  %vm173_vm3 = vcmask 130048   ;;  %v682_v21 = vld [vmem:[#allocation2] sm:$0xff]  }
  0x16   :  { %582 = vmatprep.subr.msk.bf16.mxu1 %vm59_vm0, %v580_v4  ;;  %v61_v7 = vsel %vm59_vm0, %v579_v5, 0  ;;  %v830_v20 = vpack.c.bf16 %v40_v17, %v39_v16  ;;  %v683_v23 = vld [vmem:[#allocation2 + $0x48] sm:$0xff]   ;;  %v685_v29 = vld [vmem:[#allocation2 + $0x50] sm:$0xff]   ;;  %v687_v31 = vld [vmem:[#allocation2 + $0x58] sm:$0xff]   ;;  %vm425_vm4 = vcmask 1045504   ;;  %v159_v46 = vshrl.u32 %v158_v45, 7 }
  0x17   :  { %70 = vmatpush1.bf16.msra.mxu1 %v61_v7  ;;  %v684_v28 = vld [vmem:[#allocation2 + $0x8] sm:$0xff]   ;;  %v686_v30 = vld [vmem:[#allocation2 + $0x10] sm:$0xff]   ;;  %v688_v32 = vld [vmem:[#allocation2 + $0x18] sm:$0xff]   ;;  %vm421_vm5 = vcmask 359424   ;;  %s754_s22 = smov [#allocation5]  }
  0x18   :  { %641 = vmatprep.subr.bf16.mxu1 %v752_v10  ;;  %v689_v33 = vld [vmem:[#allocation2 + $0x60] sm:$0xff]   ;;  %v691_v35 = vld [vmem:[#allocation2 + $0x68] sm:$0xff]   ;;  %v693_v37 = vld [vmem:[#allocation2 + $0x70] sm:$0xff]   ;;  %v160_v47 = vsub.s32 0, %v159_v46  ;;  %v164_v49 = vsub.s32 1, %v159_v46  ;;  %v168_v52 = vsub.s32 2, %v159_v46 }
  0x19   :  { %v690_v34 = vld [vmem:[#allocation2 + $0x20] sm:$0xff]   ;;  %v692_v36 = vld [vmem:[#allocation2 + $0x28] sm:$0xff]   ;;  %v694_v38 = vld [vmem:[#allocation2 + $0x30] sm:$0xff]   ;;  %s567_s23 = sshll.u32 %s754_s22, 4  ;;  %s568_s23 = int_to_ptr.vmem [resolvable:$true] %s567_s23 }
  0x1a   :  { %583 = vmatmul.mubr.msk.bf16.vlgmr.msra.gmra.mrb[0].mxu1 %vm55_vm1, %v44_v8  ;;  %v695_v39 = vld [vmem:[#allocation2 + $0x80] sm:$0xff]   ;;  %v696_v40 = vld [vmem:[#allocation2 + $0x78] sm:$0xff]   ;;  %v698_v42 = vld [vmem:[#allocation2 + $0x88] sm:$0xff]   ;;  %s722_s24 = scalar_lea.vmem %s568_s23, 256  ;;  %p727_p9 = scmp.lt.s32.totalorder %s568_s23, %s568_s23 }
  0x1b   :  { %642 = vmatpush3.bf16.msra.mxu1 %v67_v9  ;;  %643 = vmatprep.mubr.msk.bf16.mxu1 %vm753_vm2, %v752_v10  ;;  %v697_v41 = vld [vmem:[#allocation2 + $0x38] sm:$0xff]   ;;  %v699_v43 = vld [vmem:[#allocation2 + $0x90] sm:$0x3f]   ;;  %p723_p8 = scmp.ne.s32.totalorder %s568_s23, %s722_s24  ;;  %p728_p10 = scmp.lt.s32.totalorder %s722_s24, %s722_s24 }
  0x1c   :  { %647 = vmatprep.subr.bf16.mxu1 %v752_v10  ;;  %v427_v44 = vsel %vm425_vm4, %v699_v43, 0  ;;  %v156_v48 = vld [vmem:[%s867_s3] sm:$0x7] }
  0x1d   :  { %v161_v50 = vrot.slane %v156_v48, %v160_v47  ;;  %v165_v51 = vrot.slane %v156_v48, %v164_v49  ;;  %v169_v61 = vrot.slane %v156_v48, %v168_v52  ;;  %p729_p11 = por %p728_p10, %p727_p9 }
  0x1f   :  { %p730_p12 = pnand %p729_p11, %p723_p8 }
  0x22   :  { %644 = vmatmul.mubr.msk.bf16.vlgmr.msra.gmra.mrb[4].mxu1 %vm55_vm1, %v44_v8 }
  0x23   :  { %649 = vmatprep.mubr.msk.bf16.mxu1 %vm753_vm2, %v752_v10 }
  0xed   :  { %v103_v11 = vpop.f32.mrb[0].mxu1 }
  0xee   :  { %v105_v12 = vpop.f32.mrb[1].mxu1 }
  0xef   :  { %v107_v13 = vpop.f32.mrb[2].mxu1 }
  0xf0   :  { %v153_v14 = vpack.c.bf16 %v107_v13, %v103_v11  ;;  %v109_v15 = vpop.f32.mrb[3].mxu1 }
  0xf1   :  { %v154_v18 = vpack.c.bf16 %v109_v15, %v105_v12 }
  0xf3   :  { %177 = vmatprep.subr.bf16.mxu0 %v154_v18 }
  0xf4   :  { %178 = vmatpush1.bf16.msra.mxu0 %v153_v14 }
  0xf5   :  { %v146_v22 = vpop.f32.mrb[4].mxu1  ;;  %613 = vmatprep.subr.bf16.mxu0 %v681_v19 }
  0xf6   :  { %v645_v24 = vpop.f32.mrb[5].mxu1 }
  0xf7   :  { %v149_v25 = vpop.f32.mrb[6].mxu1  ;;  %585 = vmatmul.mubr.msk.bf16.vlgmr.msra.gmra.mrb[0].mxu0 %vm173_vm3, %v830_v20 }
  0xf8   :  { %v155_v26 = vpack.c.bf16 %v149_v25, %v146_v22  ;;  %v646_v27 = vpop.f32.mrb[7].mxu1  ;;  %614 = vmatpush3.bf16.msra.mxu0 %v682_v21 }
  0xf9   :  { %615 = vmatprep.subr.bf16.mxu0 %v683_v23 }
  0xfa   :  { %648 = vmatpush3.bf16.msra.mxu1 %v155_v26 }
  0xfb   :  { %653 = vmatprep.subr.bf16.mxu1 %v752_v10 }
  0xfc   :  { %616 = vmatpush3.bf16.msra.mxu0 %v684_v28 }
  0xfd   :  { %650 = vmatmul.mubr.msk.bf16.vlgmr.msra.gmra.mrb[8].mxu1 %vm173_vm3, %v830_v20  ;;  %617 = vmatprep.subr.bf16.mxu0 %v685_v29 }
  0xfe   :  { %659 = vmatprep.mubr.msk.bf16.mxu1 %vm753_vm2, %v752_v10  ;;  %654 = vmatpush3.bf16.msra.mxu1 %v695_v39 }
  0xff   :  { %655 = vmatprep.subr.bf16.mxu1 %v752_v10 }
 0x100   :  { %618 = vmatpush3.bf16.msra.mxu0 %v686_v30 }
 0x101   :  { %619 = vmatprep.subr.bf16.mxu0 %v687_v31 }
 0x102   :  { %656 = vmatpush3.bf16.msra.mxu1 %v698_v42 }
 0x103   :  { %657 = vmatprep.subr.bf16.mxu1 %v752_v10 }
 0x104   :  { %620 = vmatpush3.bf16.msra.mxu0 %v688_v32 }
 0x105   :  { %621 = vmatprep.subr.bf16.mxu0 %v689_v33 }
 0x106   :  { %658 = vmatpush3.bf16.msra.mxu1 %v427_v44 }
 0x107   :  { %663 = vmatprep.subr.bf16.mxu1 %v752_v10 }
 0x108   :  { %622 = vmatpush3.bf16.msra.mxu0 %v690_v34 }
 0x109   :  { %623 = vmatprep.subr.bf16.mxu0 %v691_v35 }
 0x10c   :  { %624 = vmatpush3.bf16.msra.mxu0 %v692_v36 }
 0x10d   :  { %625 = vmatprep.subr.bf16.mxu0 %v693_v37 }
 0x110   :  { %626 = vmatpush3.bf16.msra.mxu0 %v694_v38 }
 0x111   :  { %627 = vmatprep.subr.bf16.mxu0 %v696_v40 }
 0x114   :  { %628 = vmatpush3.bf16.msra.mxu0 %v697_v41 }
 0x1ca   :  { %v211_v53 = vpop.f32.mrb[0].mxu0 }
 0x1cb   :  { %v212_v54 = vadd.f32 %v211_v53, %v161_v50  ;;  %v213_v55 = vpop.f32.mrb[1].mxu0 }
 0x1cc   :  { %v214_v56 = vadd.f32 %v213_v55, %v165_v51  ;;  %v215_v57 = vpop.f32.mrb[2].mxu0 }
 0x1cd   :  { %v261_v58 = vmax.f32 %v212_v54, 0.0  ;;  %v216_v59 = vadd.f32 %v215_v57, %v161_v50  ;;  %v217_v60 = vpop.f32.mrb[3].mxu0 }
 0x1ce   :  { %v218_v62 = vadd.f32 %v217_v60, %v165_v51  ;;  %v262_v0 = vmax.f32 %v214_v56, 0.0 }
 0x1cf   :  { %v264_v63 = vmax.f32 %v216_v59, 0.0 }
 0x1d0   :  { %v265_v1 = vmax.f32 %v218_v62, 0.0  ;;  %v254_v2 = vpop.f32.mrb[8].mxu1 }
 0x1d1   :  { %v267_v3 = vpack.c.bf16 %v264_v63, %v261_v58  ;;  %v255_v4 = vadd.f32 %v254_v2, %v169_v61  ;;  %v651_v5 = vpop.f32.mrb[9].mxu1 }
 0x1d2   :  { %v268_v6 = vpack.c.bf16 %v265_v1, %v262_v0  ;;  %v257_v7 = vpop.f32.mrb[10].mxu1 }
 0x1d3   :  { %v258_v8 = vadd.f32 %v257_v7, %v169_v61  ;;  %v652_v9 = vpop.f32.mrb[11].mxu1  ;;  %v263_v11 = vmax.f32 %v255_v4, 0.0 }
 0x1d4   :  { %461 = vmatprep.mubr.bf16.mxu0 %v268_v6 }
 0x1d5   :  { %v266_v12 = vmax.f32 %v258_v8, 0.0  ;;  %462 = vmatmul.mubr.bf16.vlgmr.msra.gmra.mrb[4].mxu0 %v267_v3 }
 0x1d7   :  { %v269_v13 = vpack.c.bf16 %v266_v12, %v263_v11 }
 0x1d9   :  { %660 = vmatmul.mubr.msk.bf16.vlgmr.msra.gmra.mrb[12].mxu1 %vm421_vm5, %v269_v13 }
 0x1da   :  { %665 = vmatprep.mubr.msk.bf16.mxu1 %vm753_vm2, %v752_v10  ;;  %v607_v10 = vld [vmem:[%s869_s5] ss:$0 sm:$0xff] }
 0x2a8   :  { %v629_v14 = vpop.f32.mrb[4].mxu0 }
 0x2a9   :  { %v630_v15 = vpop.f32.mrb[5].mxu0 }
 0x2aa   :  { %v631_v16 = vadd.f32 %v630_v15, %v629_v14  ;;  %v632_v17 = vpop.f32.mrb[6].mxu0 }
 0x2ab   :  { %v633_v18 = vpop.f32.mrb[7].mxu0 }
 0x2ac   :  { %v634_v19 = vadd.f32 %v633_v18, %v632_v17  ;;  %v504_v21 = vpop.f32.mrb[12].mxu1 }
 0x2ad   :  { %v505_v22 = vadd.f32 %v631_v16, %v504_v21  ;;  %v661_v23 = vpop.f32.mrb[13].mxu1 }
 0x2ae   :  { %v507_v24 = vpop.f32.mrb[14].mxu1 }
 0x2af   :  { %v508_v25 = vadd.f32 %v634_v19, %v507_v24  ;;  %v662_v26 = vpop.f32.mrb[15].mxu1 }
 0x2b1   :  { %v511_v27 = vpack.c.bf16 %v508_v25, %v505_v22 }
 0x2b3   :  { %664 = vmatpush3.bf16.msra.mxu1 %v511_v27 }
 0x2b6   :  { %666 = vmatmul.mubr.msk.bf16.vlgmr.msra.gmra.mrb[16].mxu1 %vm173_vm3, %v830_v20 }
 0x389   :  { %v553_v28 = vpop.f32.mrb[16].mxu1 }
 0x38a   :  { %v554_v29 = vadd.f32 %v607_v10, %v553_v28  ;;  %v667_v30 = vpop.f32.mrb[17].mxu1 }
 0x38b   :  { %v556_v31 = vpop.f32.mrb[18].mxu1 }
 0x38c   :  { %560 = vst [vmem:[#allocation5] sm:$0xff] %v554_v29  ;;  %v557_v32 = vadd.f32 %v607_v10, %v556_v31  ;;  %v668_v33 = vpop.f32.mrb[19].mxu1 }
 0x38e   :  { %561 = vst [vmem:[#allocation5 + $0x8] sm:$0xff] %v557_v32 }
 0x38f   :  { %733 = shalt.err (!%p730_p12)
}
 0x390   :  { %s734_s26 = scalar_lea.hbm %s870_s6, 256 }
 0x391   :  { %p735_p13 = scmp.ne.s32.totalorder %s870_s6, %s734_s26  ;;  %p738_p0 = scmp.lt.u32.totalorder %s734_s26, %s870_s6 }
 0x393   :  { %p740_p1 = pnand %p738_p0, %p735_p13 }
 0x395   :  { %743 = shalt.err (!%p740_p1)
}
 0x396   :  { %s755_s7 = smov 128   ;;  %s756_s8 = smov 8  }
 0x397   :  { %573 = dma.vmem_to_hbm [thread:$0]  %s568_s23, 256, %s870_s6, [#allocation4], %s755_s7, %s755_s7, %s756_s8  }
 0x398   :  { %746 = dma.done.wait [#allocation4], 256  }
 0x399   :  { %747 = vsyncadd [#allocation4], 4294967040 }
 0x39a   :  { %577 = vsyncpa [#allocation3], 1 }
 0x39b   :  { %578 = vsyncpa [#allocation4], 1 }

</bundles_post_ra>
